<compile_context>
chip_gen: v7x
topology: tpu7x:2x2x1
jax: 0.10.0
libtpu: 0.0.40
codegen_flags: <defaults>
</compile_context>

<pallas_src>
import functools
import re

import jax
import jax.numpy as jnp
from jax.experimental import pallas as pl
from jax.experimental.pallas import tpu as pltpu


def _round_up(n, m):
    return (n + m - 1) // m * m


def _tpu_vmem_and_generation():
    """Best-effort per-core VMEM capacity (bytes) and TPU generation."""
    vmem = None
    gen = None
    try:
        vmem = int(pltpu.get_tpu_info().vmem_capacity_bytes)
    except Exception:
        pass
    try:
        kind = jax.devices()[0].device_kind  # e.g. "TPU v5 lite", "TPU v6e"
        m = re.search(r"(\d+)", kind)
        if m:
            gen = int(m.group(1))
    except Exception:
        pass
    if gen is None:
        gen = 6
    if vmem is None:
        vmem = (64 << 20) if gen >= 7 else (128 << 20)
    return vmem, gen


def _mlp_kernel(num_layers, act_dtype, n_chunk_lanes, *refs):
    # refs = (x_ref, w0, b0, ..., w_{L-1}, b_{L-1}, out_ref, [scrA, scrB])
    x_ref = refs[0]
    params = refs[1:1 + 2 * num_layers]
    o_ref = refs[1 + 2 * num_layers]
    scratch = refs[2 + 2 * num_layers:]

    if not scratch:
        # Simple path: the live activation stays in vregs across layers
        # (only used when it comfortably fits the 64-vreg file).
        h = x_ref[...]
        for i in range(num_layers):
            w = params[2 * i][...]
            b = params[2 * i + 1][...]
            # MXU consumes operands in the weight dtype (bf16 stays bf16 ->
            # 2x rate on v6e/v7x); accumulation is f32.
            h = jnp.dot(h.astype(w.dtype), w, preferred_element_type=jnp.float32)
            h = h + b.astype(jnp.float32)          # bias add in f32 (v5e-safe)
            if i < num_layers - 1:
                # Inter-layer activation in act_dtype (bf16 on v6e/v7x bf16
                # path, f32 otherwise); ReLU on all but the last layer.
                h = jnp.maximum(h.astype(act_dtype), 0)
        o_ref[...] = h.astype(o_ref.dtype)
        return

    # Scratch-staged path: ping-pong the inter-layer activation through VMEM
    # and write each layer's output in 256-lane chunks to bound vreg pressure.
    scr = (scratch[0], scratch[1])
    for i in range(num_layers):
        w_ref = params[2 * i]
        b_ref = params[2 * i + 1]
        in_p, out_p = w_ref.shape
        last = i == num_layers - 1
        if i == 0:
            x_in = x_ref[...]
        else:
            x_in = scr[(i - 1) % 2][:, :in_p]      # only the valid lanes
        start = 0
        while start < out_p:                       # static (trace-time) loop
            width = min(n_chunk_lanes, out_p - start)
            w_c = w_ref[:, start:start + width]
            y = jnp.dot(x_in.astype(w_c.dtype), w_c,
                        preferred_element_type=jnp.float32)
            y = y + b_ref[:, start:start + width].astype(jnp.float32)
            if last:
                o_ref[:, start:start + width] = y.astype(o_ref.dtype)
            else:
                scr[i % 2][:, start:start + width] = \
                    jnp.maximum(y.astype(act_dtype), 0)
            start += width


def pad_mlp_params(weights, biases):
    """Zero-pad weights/biases to lane-dense multiples of 128.

    Call this ONCE at init (outside the hot path) so every forward avoids
    re-padding parameters in HBM. Returns (padded_weights, padded_biases) with
    weights (in_p, out_p) and biases (1, out_p).
    """
    pw, pb = [], []
    for w, b in zip(weights, biases):
        in_d, out_d = w.shape
        in_p, out_p = _round_up(in_d, 128), _round_up(out_d, 128)
        if (in_p, out_p) != (in_d, out_d):
            w = jnp.pad(w, ((0, in_p - in_d), (0, out_p - out_d)))
        b2 = b.reshape(1, -1)
        if b2.shape[1] != out_p:
            b2 = jnp.pad(b2, ((0, 0), (0, out_p - b2.shape[1])))
        pw.append(w)
        pb.append(b2)
    return pw, pb


def mlp_forward(x, weights, biases, *, out_dim=None, block_m=None,
                act_dtype=None, n_chunk_lanes=256):
    """Run the whole MLP in one fused Pallas kernel, tiled over the batch dim.

    x:       (M, input_dim)
    weights: list of (in_d, out_d) arrays (optionally pre-padded to x128)
    biases:  list of (out_d,) or (1, out_d) arrays (optionally pre-padded)
    out_dim: logical output dim (required if params are pre-padded)

    For best performance pre-pad params once with pad_mlp_params(), feed bf16
    operands (MXU-native on every generation), and wrap the call in jax.jit so
    the residual x-pad / out-slice fuse with the surrounding graph.
    """
    num_layers = len(weights)
    if out_dim is None:
        out_dim = weights[-1].shape[1]

    M, d_in = x.shape
    x_itemsize = jnp.dtype(x.dtype).itemsize

    vmem_cap, gen = _tpu_vmem_and_generation()

    # No-op if params are already padded (pre-pad once outside the hot loop).
    pw, pb = pad_mlp_params(weights, biases)

    d_in_pad = _round_up(d_in, 128)
    assert pw[0].shape[0] == d_in_pad, "input dim does not match first layer"

    param_bytes = sum(w.size * w.dtype.itemsize + b.size * b.dtype.itemsize
                      for w, b in zip(pw, pb))
    max_feat_pad = max([d_in_pad] + [w.shape[1] for w in pw])
    out_pad = pw[-1].shape[1]

    param_dtype = pw[0].dtype
    if act_dtype is None:
        # v6e/v7x VPUs are bf16-native: keep the inter-layer activation in bf16
        # for the bf16 path; v5e and the f32 path keep a f32 epilogue.
        act_dtype = (jnp.bfloat16
                     if (gen >= 6 and param_dtype == jnp.bfloat16)
                     else jnp.float32)
    act_itemsize = jnp.dtype(act_dtype).itemsize

    # ---- VMEM footprint model ------------------------------------------
    def needs_scratch(bm):
        # Keep h in vregs only while it stays well under the 64-vreg file.
        return bm * max_feat_pad * 4 > 128 * 1024

    def footprint(bm, with_scratch):
        fp = 2 * bm * d_in_pad * x_itemsize        # x tile, double-buffered
        fp += 2 * bm * out_pad * x_itemsize        # out tile, double-buffered
        fp += param_bytes                          # params, single-buffered
        if with_scratch:
            fp += 2 * bm * max_feat_pad * act_itemsize   # ping-pong activation
        fp += bm * max_feat_pad * 4                # live f32 chunk headroom
        return fp

    vmem_budget = int(0.80 * vmem_cap)

    if block_m is None:
        cap = max(128, _round_up(min(M, 512), 128))
        cands = [512, 256, 128] if gen >= 6 else [256, 128]
        cands = sorted({min(c, cap) for c in cands}, reverse=True)
        block_m = cands[-1]
        for c in cands:
            if footprint(c, needs_scratch(c)) <= vmem_budget:
                block_m = c
                break
    use_scratch = needs_scratch(block_m)

    m_pad = _round_up(M, block_m)
    if (m_pad, d_in_pad) != (M, d_in):
        x_p = jnp.pad(x, ((0, m_pad - M), (0, d_in_pad - d_in)))
    else:
        x_p = x

    # ---- specs ------------------------------------------------------------
    in_specs = [pl.BlockSpec((block_m, d_in_pad), lambda i: (i, 0))]
    flat_params = []
    for w, b in zip(pw, pb):
        flat_params.extend([w, b])
        # Grid-invariant parameters: whole-array, single-buffered, resident
        # in VMEM for the entire kernel (no per-step DMA, no second copy).
        in_specs.append(pl.BlockSpec(memory_space=pltpu.MemorySpace.VMEM))
        in_specs.append(pl.BlockSpec(memory_space=pltpu.MemorySpace.VMEM))

    scratch_shapes = []
    if use_scratch:
        scratch_shapes = [pltpu.VMEM((block_m, max_feat_pad), act_dtype),
                          pltpu.VMEM((block_m, max_feat_pad), act_dtype)]

    vmem_needed = footprint(block_m, use_scratch)
    # ~87.5% of capacity: ~112 MiB on v5e/v6e, ~56 MiB per-core on v7x
    # (leaves Mosaic internal-scratch headroom; weights are duplicated per TC
    # when the batch grid is split "parallel" across the 2 v7x TensorCores).
    vmem_ceiling = int(0.875 * vmem_cap)
    vmem_limit = max(32 << 20, int(1.25 * vmem_needed) + (2 << 20))
    vmem_limit = max(vmem_limit, vmem_needed)
    vmem_limit = min(vmem_limit, vmem_ceiling)

    flops = sum(2 * m_pad * w.shape[0] * w.shape[1] for w in pw)
    bytes_accessed = (x_p.size * x_itemsize
                      + param_bytes                     # params read once
                      + m_pad * out_pad * x_itemsize)
    cost = pl.CostEstimate(flops=int(flops), transcendentals=0,
                           bytes_accessed=int(bytes_accessed))

    kernel = functools.partial(_mlp_kernel, num_layers, act_dtype, n_chunk_lanes)

    out_full = pl.pallas_call(
        kernel,
        out_shape=jax.ShapeDtypeStruct((m_pad, out_pad), x.dtype),
        grid_spec=pltpu.PrefetchScalarGridSpec(
            num_scalar_prefetch=0,
            grid=(m_pad // block_m,),
            in_specs=in_specs,
            out_specs=pl.BlockSpec((block_m, out_pad), lambda i: (i, 0)),
            scratch_shapes=scratch_shapes,
        ),
        compiler_params=pltpu.CompilerParams(
            dimension_semantics=("parallel",),
            vmem_limit_bytes=vmem_limit,
        ),
        cost_estimate=cost,
    )(x_p, *flat_params)

    if (m_pad, out_pad) != (M, out_dim):
        out_full = out_full[:M, :out_dim]
    return out_full


def init_mlp_params(key, input_dim, hidden_dim, output_dim, num_layers,
                    dtype=jnp.float32):
    """Deterministic synthetic init matching nn.Linear shapes.

    Mimics PyTorch's uniform(-1/sqrt(fan_in), 1/sqrt(fan_in)) init; weights are
    stored (in_d, out_d) so the kernel does x @ W.
    """
    hidden = [hidden_dim] * (num_layers - 1)
    in_dims = [input_dim] + hidden
    out_dims = hidden + [output_dim]
    weights, biases = [], []
    for in_d, out_d in zip(in_dims, out_dims):
        key, kw, kb = jax.random.split(key, 3)
        bound = 1.0 / (in_d ** 0.5)
        w = jax.random.uniform(kw, (in_d, out_d), dtype, -bound, bound)
        b = jax.random.uniform(kb, (out_d,), dtype, -bound, bound)
        weights.append(w)
        biases.append(b)
    return weights, biases


def mlp_reference(x, weights, biases):
    h = x
    n = len(weights)
    for i, (w, b) in enumerate(zip(weights, biases)):
        h = jnp.dot(h, w, precision=jax.lax.Precision.HIGHEST) + b
        if i < n - 1:
            h = jnp.maximum(h, 0.0)
    return h


if __name__ == "__main__":
    key = jax.random.PRNGKey(0)

    # ---- Config 1: small MLP, f32 (simple in-vreg path) --------------------
    input_dim, hidden_dim, output_dim, num_layers = 32, 64, 16, 3
    batch = 256
    key, kx, kp = jax.random.split(key, 3)
    x = jax.random.normal(kx, (batch, input_dim), jnp.float32)
    weights, biases = init_mlp_params(kp, input_dim, hidden_dim, output_dim,
                                      num_layers)
    ref = mlp_reference(x, weights, biases)

    # Pre-pad params ONCE and jit the forward so the residual pad/slice fuse.
    pw, pb = pad_mlp_params(weights, biases)
    fwd = jax.jit(functools.partial(mlp_forward, out_dim=output_dim))

    out = jax.block_until_ready(fwd(x, pw, pb))
    assert out.shape == (batch, output_dim)
    assert jnp.allclose(out, ref, atol=1e-2, rtol=1e-2), "f32 mismatch vs reference"

    # ---- Config 2: bf16 operands (MXU-native; bf16 activations on v6e/v7x) -
    x_bf = x.astype(jnp.bfloat16)
    pw_bf = [w.astype(jnp.bfloat16) for w in pw]
    pb_bf = [b.astype(jnp.bfloat16) for b in pb]
    out_bf = jax.block_until_ready(fwd(x_bf, pw_bf, pb_bf))
    assert out_bf.shape == (batch, output_dim)
    assert jnp.allclose(out_bf.astype(jnp.float32), ref, atol=1.5e-1, rtol=1e-1), \
        "bf16 mismatch vs reference"

    # ---- Config 3: wider hidden dim + multi-step grid (VMEM-staged path) ---
    in2, hid2, out2, L2 = 64, 256, 32, 3
    key, kx2, kp2 = jax.random.split(key, 3)
    x2 = jax.random.normal(kx2, (320, in2), jnp.float32)
    w2, b2 = init_mlp_params(kp2, in2, hid2, out2, L2)
    out2_k = jax.block_until_ready(mlp_forward(x2, w2, b2, block_m=256))
    ref2 = mlp_reference(x2, w2, b2)
    assert out2_k.shape == (320, out2)
    assert jnp.allclose(out2_k, ref2, atol=1e-2, rtol=1e-2), \
        "scratch-path mismatch vs reference"

    print("KERNEL_OK")
</pallas_src>

<mosaic_0001>
module attributes {stable_mosaic.version = 11 : i64} {
  func.func @_mlp_kernel(%arg0: i32, %arg1: memref<256x128xf32, #tpu.memory_space<vmem>>, %arg2: memref<128x128xf32, #tpu.memory_space<vmem>>, %arg3: memref<1x128xf32, #tpu.memory_space<vmem>>, %arg4: memref<128x128xf32, #tpu.memory_space<vmem>>, %arg5: memref<1x128xf32, #tpu.memory_space<vmem>>, %arg6: memref<128x128xf32, #tpu.memory_space<vmem>>, %arg7: memref<1x128xf32, #tpu.memory_space<vmem>>, %arg8: memref<256x128xf32, #tpu.memory_space<vmem>>) attributes {dimension_semantics = [#tpu.dimension_semantics<parallel>], iteration_bounds = array<i64: 1>, scalar_prefetch = 0 : i64, scratch_operands = 0 : i64, tpu.core_type = #tpu.core_type<tc>, window_params = [{transform_indices = @transform_0, window_bounds = array<i64: 256, 128>}, {pipeline_mode = #tpu.pipeline_mode<synchronous>, transform_indices = @transform_1, window_bounds = array<i64: 128, 128>}, {pipeline_mode = #tpu.pipeline_mode<synchronous>, transform_indices = @transform_2, window_bounds = array<i64: 1, 128>}, {pipeline_mode = #tpu.pipeline_mode<synchronous>, transform_indices = @transform_3, window_bounds = array<i64: 128, 128>}, {pipeline_mode = #tpu.pipeline_mode<synchronous>, transform_indices = @transform_4, window_bounds = array<i64: 1, 128>}, {pipeline_mode = #tpu.pipeline_mode<synchronous>, transform_indices = @transform_5, window_bounds = array<i64: 128, 128>}, {pipeline_mode = #tpu.pipeline_mode<synchronous>, transform_indices = @transform_6, window_bounds = array<i64: 1, 128>}, {transform_indices = @transform_7, window_bounds = array<i64: 256, 128>}]} {
    %c0 = arith.constant 0 : index
    %c0_0 = arith.constant 0 : index
    %0 = vector.load %arg1[%c0, %c0_0] : memref<256x128xf32, #tpu.memory_space<vmem>>, vector<256x128xf32>
    %c0_1 = arith.constant 0 : index
    %c0_2 = arith.constant 0 : index
    %1 = vector.load %arg2[%c0_1, %c0_2] : memref<128x128xf32, #tpu.memory_space<vmem>>, vector<128x128xf32>
    %c0_3 = arith.constant 0 : index
    %c0_4 = arith.constant 0 : index
    %2 = vector.load %arg3[%c0_3, %c0_4] : memref<1x128xf32, #tpu.memory_space<vmem>>, vector<1x128xf32>
    %cst = arith.constant dense<0.000000e+00> : vector<256x128xf32>
    %3 = tpu.matmul %0, %1, %cst {dimension_numbers = #tpu.dot_dimension_numbers<[1], [0], [0], [1], [0, 0, 1, 1], [], []>} : vector<256x128xf32>, vector<128x128xf32>, vector<256x128xf32> -> vector<256x128xf32>
    %4 = vector.broadcast %2 : vector<1x128xf32> to vector<256x128xf32>
    %5 = arith.addf %3, %4 : vector<256x128xf32>
    %cst_5 = arith.constant 0.000000e+00 : f32
    %6 = vector.broadcast %cst_5 : f32 to vector<256x128xf32>
    %7 = arith.maximumf %5, %6 : vector<256x128xf32>
    %c0_6 = arith.constant 0 : index
    %c0_7 = arith.constant 0 : index
    %8 = vector.load %arg4[%c0_6, %c0_7] : memref<128x128xf32, #tpu.memory_space<vmem>>, vector<128x128xf32>
    %c0_8 = arith.constant 0 : index
    %c0_9 = arith.constant 0 : index
    %9 = vector.load %arg5[%c0_8, %c0_9] : memref<1x128xf32, #tpu.memory_space<vmem>>, vector<1x128xf32>
    %cst_10 = arith.constant dense<0.000000e+00> : vector<256x128xf32>
    %10 = tpu.matmul %7, %8, %cst_10 {dimension_numbers = #tpu.dot_dimension_numbers<[1], [0], [0], [1], [0, 0, 1, 1], [], []>} : vector<256x128xf32>, vector<128x128xf32>, vector<256x128xf32> -> vector<256x128xf32>
    %11 = vector.broadcast %9 : vector<1x128xf32> to vector<256x128xf32>
    %12 = arith.addf %10, %11 : vector<256x128xf32>
    %cst_11 = arith.constant 0.000000e+00 : f32
    %13 = vector.broadcast %cst_11 : f32 to vector<256x128xf32>
    %14 = arith.maximumf %12, %13 : vector<256x128xf32>
    %c0_12 = arith.constant 0 : index
    %c0_13 = arith.constant 0 : index
    %15 = vector.load %arg6[%c0_12, %c0_13] : memref<128x128xf32, #tpu.memory_space<vmem>>, vector<128x128xf32>
    %c0_14 = arith.constant 0 : index
    %c0_15 = arith.constant 0 : index
    %16 = vector.load %arg7[%c0_14, %c0_15] : memref<1x128xf32, #tpu.memory_space<vmem>>, vector<1x128xf32>
    %cst_16 = arith.constant dense<0.000000e+00> : vector<256x128xf32>
    %17 = tpu.matmul %14, %15, %cst_16 {dimension_numbers = #tpu.dot_dimension_numbers<[1], [0], [0], [1], [0, 0, 1, 1], [], []>} : vector<256x128xf32>, vector<128x128xf32>, vector<256x128xf32> -> vector<256x128xf32>
    %18 = vector.broadcast %16 : vector<1x128xf32> to vector<256x128xf32>
    %19 = arith.addf %17, %18 : vector<256x128xf32>
    %c0_17 = arith.constant 0 : index
    %c0_18 = arith.constant 0 : index
    %20 = vector.load %arg8[%c0_17, %c0_18] : memref<256x128xf32, #tpu.memory_space<vmem>>, vector<256x128xf32>
    tpu.vector_store %arg8[%c0_17, %c0_18], %19 {strides = array<i32>} : memref<256x128xf32, #tpu.memory_space<vmem>>, vector<256x128xf32>,
    return
  }
  func.func @transform_0(%arg0: i32) -> (i32, i32) {
    %c0_i32 = arith.constant 0 : i32
    %c0_i32_0 = arith.constant 0 : i32
    return %arg0, %c0_i32 : i32, i32
  }
  func.func @transform_1(%arg0: i32) -> (i32, i32) {
    %c0_i32 = arith.constant 0 : i32
    %c0_i32_0 = arith.constant 0 : i32
    %c0_i32_1 = arith.constant 0 : i32
    return %c0_i32, %c0_i32_0 : i32, i32
  }
  func.func @transform_2(%arg0: i32) -> (i32, i32) {
    %c0_i32 = arith.constant 0 : i32
    %c0_i32_0 = arith.constant 0 : i32
    %c0_i32_1 = arith.constant 0 : i32
    return %c0_i32, %c0_i32_0 : i32, i32
  }
  func.func @transform_3(%arg0: i32) -> (i32, i32) {
    %c0_i32 = arith.constant 0 : i32
    %c0_i32_0 = arith.constant 0 : i32
    %c0_i32_1 = arith.constant 0 : i32
    return %c0_i32, %c0_i32_0 : i32, i32
  }
  func.func @transform_4(%arg0: i32) -> (i32, i32) {
    %c0_i32 = arith.constant 0 : i32
    %c0_i32_0 = arith.constant 0 : i32
    %c0_i32_1 = arith.constant 0 : i32
    return %c0_i32, %c0_i32_0 : i32, i32
  }
  func.func @transform_5(%arg0: i32) -> (i32, i32) {
    %c0_i32 = arith.constant 0 : i32
    %c0_i32_0 = arith.constant 0 : i32
    %c0_i32_1 = arith.constant 0 : i32
    return %c0_i32, %c0_i32_0 : i32, i32
  }
  func.func @transform_6(%arg0: i32) -> (i32, i32) {
    %c0_i32 = arith.constant 0 : i32
    %c0_i32_0 = arith.constant 0 : i32
    %c0_i32_1 = arith.constant 0 : i32
    return %c0_i32, %c0_i32_0 : i32, i32
  }
  func.func @transform_7(%arg0: i32) -> (i32, i32) {
    %c0_i32 = arith.constant 0 : i32
    %c0_i32_0 = arith.constant 0 : i32
    return %arg0, %c0_i32 : i32, i32
  }
}

</mosaic_0001>

<bundles_post_ra>
// kernel: mlp_forward.1
= control target key start
LH: loop header
LB: loop body
LE: loop exit
PB: predicated region body
PF: predicated region fallthrough
CT: control target
= control target key end

     0   :  { %s1915_s1 = inlined_call_operand.vmem [shape: f32[128,128], index: 1, kind: input, shape index: {}]   ;;  %s1916_s0 = inlined_call_operand.vmem [shape: f32[256,128], index: 0, kind: input, shape index: {}]   ;;  %s1917_s3 = inlined_call_operand.vmem [shape: f32[128,128], index: 3, kind: input, shape index: {}]   ;;  %s1918_s5 = inlined_call_operand.vmem [shape: f32[128,128], index: 5, kind: input, shape index: {}]   ;;  %s1919_s2 = inlined_call_operand.vmem [shape: f32[1,128], index: 2, kind: input, shape index: {}]   ;;  %s1920_s4 = inlined_call_operand.vmem [shape: f32[1,128], index: 4, kind: input, shape index: {}]   ;;  %s1921_s6 = inlined_call_operand.vmem [shape: f32[1,128], index: 6, kind: input, shape index: {}]   ;;  %s1922_s7 = inlined_call_operand.vmem [shape: f32[256,128], index: 7, kind: output, shape index: {}]  }
   0x1   :  { %v58_v0 = vld [vmem:[%s1915_s1] sm:$0xff]  ;;  %v59_v1 = vld [vmem:[%s1915_s1 + $0x8] sm:$0xff]  ;;  %v60_v2 = vld [vmem:[%s1915_s1 + $0x10] sm:$0xff] }
   0x2   :  { %v1289_v3 = vpack.c.bf16 %v59_v1, %v58_v0  ;;  %v61_v4 = vld [vmem:[%s1915_s1 + $0x18] sm:$0xff]  ;;  %v62_v6 = vld [vmem:[%s1915_s1 + $0x20] sm:$0xff]  ;;  %v63_v7 = vld [vmem:[%s1915_s1 + $0x28] sm:$0xff] }
   0x3   :  { %v1293_v5 = vpack.c.bf16 %v61_v4, %v60_v2  ;;  %v1297_v8 = vpack.c.bf16 %v63_v7, %v62_v6  ;;  %v26_v9 = vld [vmem:[%s1916_s0] sm:$0xff]  ;;  %v64_v10 = vld [vmem:[%s1915_s1 + $0x30] sm:$0xff]  ;;  %v65_v11 = vld [vmem:[%s1915_s1 + $0x38] sm:$0xff] }
   0x4   :  { %1290 = vmatprep.subr.bf16.mxu0 %v1289_v3  ;;  %1385 = vmatprep.subr.bf16.mxu1 %v1289_v3  ;;  %v1301_v12 = vpack.c.bf16 %v65_v11, %v64_v10  ;;  %v66_v13 = vld [vmem:[%s1915_s1 + $0x40] sm:$0xff]  ;;  %v67_v14 = vld [vmem:[%s1915_s1 + $0x48] sm:$0xff]  ;;  %v68_v17 = vld [vmem:[%s1915_s1 + $0x50] sm:$0xff] }
   0x5   :  { %1292 = vmatpush3.bf16.msra.mxu0 %v1289_v3  ;;  %1393 = vmatpush3.bf16.msra.mxu1 %v1289_v3  ;;  %v42_v15 = vld [vmem:[%s1916_s0 + $0x80] sm:$0xff]  ;;  %v1305_v16 = vpack.c.bf16 %v67_v14, %v66_v13  ;;  %v69_v18 = vld [vmem:[%s1915_s1 + $0x58] sm:$0xff]  ;;  %v71_v21 = vld [vmem:[%s1915_s1 + $0x68] sm:$0xff] }
   0x6   :  { %1294 = vmatprep.subr.bf16.mxu0 %v1293_v5  ;;  %1386 = vmatprep.subr.bf16.mxu1 %v1293_v5  ;;  %v1309_v19 = vpack.c.bf16 %v69_v18, %v68_v17  ;;  %v70_v20 = vld [vmem:[%s1915_s1 + $0x60] sm:$0xff]  ;;  %v72_v23 = vld [vmem:[%s1915_s1 + $0x70] sm:$0xff]  ;;  %v73_v24 = vld [vmem:[%s1915_s1 + $0x78] sm:$0xff] }
   0x7   :  { %1081 = vmatprep.mubr.f32.mxu0 %v26_v9  ;;  %1105 = vmatprep.mubr.f32.mxu1 %v42_v15  ;;  %v1313_v22 = vpack.c.bf16 %v71_v21, %v70_v20  ;;  %v1317_v25 = vpack.c.bf16 %v73_v24, %v72_v23  ;;  %v338_v26 = vld [vmem:[%s1917_s3] sm:$0xff]  ;;  %v339_v27 = vld [vmem:[%s1917_s3 + $0x8] sm:$0xff]  ;;  %v340_v29 = vld [vmem:[%s1917_s3 + $0x10] sm:$0xff] }
   0x8   :  { %v1321_v28 = vpack.c.bf16 %v339_v27, %v338_v26  ;;  %v341_v30 = vld [vmem:[%s1917_s3 + $0x18] sm:$0xff]  ;;  %v27_v31 = vld [vmem:[%s1916_s0 + $0x8] sm:$0xff]  ;;  %v28_v33 = vld [vmem:[%s1916_s0 + $0x10] sm:$0xff] }
   0x9   :  { %1296 = vmatpush3.bf16.msra.mxu0 %v1293_v5  ;;  %1394 = vmatpush3.bf16.msra.mxu1 %v1293_v5  ;;  %v43_v32 = vld [vmem:[%s1916_s0 + $0x88] sm:$0xff]  ;;  %v44_v34 = vld [vmem:[%s1916_s0 + $0x90] sm:$0xff]  ;;  %v1325_v35 = vpack.c.bf16 %v341_v30, %v340_v29  ;;  %v342_v36 = vld [vmem:[%s1917_s3 + $0x20] sm:$0xff] }
   0xa   :  { %1298 = vmatprep.subr.bf16.mxu0 %v1297_v8  ;;  %1387 = vmatprep.subr.bf16.mxu1 %v1297_v8  ;;  %v343_v37 = vld [vmem:[%s1917_s3 + $0x28] sm:$0xff]  ;;  %v29_v38 = vld [vmem:[%s1916_s0 + $0x18] sm:$0xff]  ;;  %v30_v40 = vld [vmem:[%s1916_s0 + $0x20] sm:$0xff] }
   0xb   :  { %v45_v39 = vld [vmem:[%s1916_s0 + $0x98] sm:$0xff]  ;;  %v46_v41 = vld [vmem:[%s1916_s0 + $0xa0] sm:$0xff]  ;;  %v1329_v42 = vpack.c.bf16 %v343_v37, %v342_v36  ;;  %v344_v43 = vld [vmem:[%s1917_s3 + $0x30] sm:$0xff] }
   0xc   :  { %v345_v44 = vld [vmem:[%s1917_s3 + $0x38] sm:$0xff]  ;;  %v31_v45 = vld [vmem:[%s1916_s0 + $0x28] sm:$0xff]  ;;  %v32_v47 = vld [vmem:[%s1916_s0 + $0x30] sm:$0xff] }
   0xd   :  { %1300 = vmatpush3.bf16.msra.mxu0 %v1297_v8  ;;  %1395 = vmatpush3.bf16.msra.mxu1 %v1297_v8  ;;  %v47_v46 = vld [vmem:[%s1916_s0 + $0xa8] sm:$0xff]  ;;  %v48_v48 = vld [vmem:[%s1916_s0 + $0xb0] sm:$0xff]  ;;  %v1333_v49 = vpack.c.bf16 %v345_v44, %v344_v43  ;;  %v346_v50 = vld [vmem:[%s1917_s3 + $0x40] sm:$0xff] }
   0xe   :  { %1302 = vmatprep.subr.bf16.mxu0 %v1301_v12  ;;  %1388 = vmatprep.subr.bf16.mxu1 %v1301_v12  ;;  %v347_v51 = vld [vmem:[%s1917_s3 + $0x48] sm:$0xff]  ;;  %v33_v52 = vld [vmem:[%s1916_s0 + $0x38] sm:$0xff]  ;;  %v34_v54 = vld [vmem:[%s1916_s0 + $0x40] sm:$0xff] }
   0xf   :  { %v49_v53 = vld [vmem:[%s1916_s0 + $0xb8] sm:$0xff]  ;;  %v50_v55 = vld [vmem:[%s1916_s0 + $0xc0] sm:$0xff]  ;;  %v1337_v56 = vpack.c.bf16 %v347_v51, %v346_v50  ;;  %v348_v57 = vld [vmem:[%s1917_s3 + $0x50] sm:$0xff] }
  0x10   :  { %v349_v58 = vld [vmem:[%s1917_s3 + $0x58] sm:$0xff]  ;;  %v35_v59 = vld [vmem:[%s1916_s0 + $0x48] sm:$0xff]  ;;  %v36_v61 = vld [vmem:[%s1916_s0 + $0x50] sm:$0xff] }
  0x11   :  { %1304 = vmatpush3.bf16.msra.mxu0 %v1301_v12  ;;  %1396 = vmatpush3.bf16.msra.mxu1 %v1301_v12  ;;  %v51_v60 = vld [vmem:[%s1916_s0 + $0xc8] sm:$0xff]  ;;  %v52_v62 = vld [vmem:[%s1916_s0 + $0xd0] sm:$0xff]  ;;  %v1341_v63 = vpack.c.bf16 %v349_v58, %v348_v57  ;;  %v350_v0 = vld [vmem:[%s1917_s3 + $0x60] sm:$0xff] }
  0x12   :  { %1306 = vmatprep.subr.bf16.mxu0 %v1305_v16  ;;  %1389 = vmatprep.subr.bf16.mxu1 %v1305_v16  ;;  %v351_v1 = vld [vmem:[%s1917_s3 + $0x68] sm:$0xff]  ;;  %v37_v2 = vld [vmem:[%s1916_s0 + $0x58] sm:$0xff]  ;;  %v38_v4 = vld [vmem:[%s1916_s0 + $0x60] sm:$0xff] }
  0x13   :  { %v53_v3 = vld [vmem:[%s1916_s0 + $0xd8] sm:$0xff]  ;;  %v54_v5 = vld [vmem:[%s1916_s0 + $0xe0] sm:$0xff]  ;;  %v1345_v6 = vpack.c.bf16 %v351_v1, %v350_v0  ;;  %v39_v7 = vld [vmem:[%s1916_s0 + $0x68] sm:$0xff] }
  0x14   :  { %v55_v8 = vld [vmem:[%s1916_s0 + $0xe8] sm:$0xff]  ;;  %v40_v9 = vld [vmem:[%s1916_s0 + $0x70] sm:$0xff]  ;;  %v41_v11 = vld [vmem:[%s1916_s0 + $0x78] sm:$0xff] }
  0x15   :  { %1308 = vmatpush3.bf16.msra.mxu0 %v1305_v16  ;;  %1397 = vmatpush3.bf16.msra.mxu1 %v1305_v16  ;;  %v56_v10 = vld [vmem:[%s1916_s0 + $0xf0] sm:$0xff]  ;;  %v57_v12 = vld [vmem:[%s1916_s0 + $0xf8] sm:$0xff]  ;;  %v618_v16 = vld [vmem:[%s1918_s5] sm:$0xff] }
  0x16   :  { %1310 = vmatprep.subr.bf16.mxu0 %v1309_v19  ;;  %1390 = vmatprep.subr.bf16.mxu1 %v1309_v19  ;;  %v352_v13 = vld [vmem:[%s1917_s3 + $0x70] sm:$0xff]  ;;  %v353_v14 = vld [vmem:[%s1917_s3 + $0x78] sm:$0xff]  ;;  %v619_v17 = vld [vmem:[%s1918_s5 + $0x8] sm:$0xff] }
  0x17   :  { %v1349_v15 = vpack.c.bf16 %v353_v14, %v352_v13  ;;  %v620_v18 = vld [vmem:[%s1918_s5 + $0x10] sm:$0xff]  ;;  %v621_v20 = vld [vmem:[%s1918_s5 + $0x18] sm:$0xff]  ;;  %v623_v23 = vld [vmem:[%s1918_s5 + $0x28] sm:$0xff] }
  0x18   :  { %v1357_v21 = vpack.c.bf16 %v621_v20, %v620_v18  ;;  %v625_v26 = vld [vmem:[%s1918_s5 + $0x38] sm:$0xff]  ;;  %v627_v29 = vld [vmem:[%s1918_s5 + $0x48] sm:$0xff]  ;;  %v1678_v37 = vld [vmem:[%s1919_s2] ss:$0 sm:$0xff] }
  0x19   :  { %1312 = vmatpush3.bf16.msra.mxu0 %v1309_v19  ;;  %1398 = vmatpush3.bf16.msra.mxu1 %v1309_v19  ;;  %v1353_v19 = vpack.c.bf16 %v619_v17, %v618_v16 }
  0x1a   :  { %1314 = vmatprep.subr.bf16.mxu0 %v1313_v22  ;;  %1391 = vmatprep.subr.bf16.mxu1 %v1313_v22 }
  0x1d   :  { %1316 = vmatpush3.bf16.msra.mxu0 %v1313_v22  ;;  %1399 = vmatpush3.bf16.msra.mxu1 %v1313_v22  ;;  %v622_v22 = vld [vmem:[%s1918_s5 + $0x20] sm:$0xff] }
  0x1e   :  { %1318 = vmatprep.subr.bf16.mxu0 %v1317_v25  ;;  %1392 = vmatprep.subr.bf16.mxu1 %v1317_v25  ;;  %v1361_v24 = vpack.c.bf16 %v623_v23, %v622_v22 }
  0x21   :  { %1320 = vmatpush3.bf16.msra.mxu0 %v1317_v25  ;;  %1400 = vmatpush3.bf16.msra.mxu1 %v1317_v25  ;;  %v624_v25 = vld [vmem:[%s1918_s5 + $0x30] sm:$0xff] }
  0x22   :  { %1322 = vmatprep.subr.bf16.mxu1 %v1321_v28  ;;  %1354 = vmatprep.subr.bf16.mxu0 %v1353_v19  ;;  %v1365_v27 = vpack.c.bf16 %v625_v26, %v624_v25 }
  0x24   :  { %1082 = vmatmul.mubr.f32.vlgmr.msra.gmra.mrb[0].mxu0 %v27_v31  ;;  %1106 = vmatmul.mubr.f32.vlgmr.msra.gmra.mrb[0].mxu1 %v43_v32  ;;  %v628_v31 = vld [vmem:[%s1918_s5 + $0x50] sm:$0xff]  ;;  %v629_v32 = vld [vmem:[%s1918_s5 + $0x58] sm:$0xff] }
  0x25   :  { %1084 = vmatprep.mubr.f32.mxu0 %v28_v33  ;;  %1108 = vmatprep.mubr.f32.mxu1 %v44_v34  ;;  %v1373_v33 = vpack.c.bf16 %v629_v32, %v628_v31  ;;  %v630_v34 = vld [vmem:[%s1918_s5 + $0x60] sm:$0xff] }
  0x26   :  { %1324 = vmatpush3.bf16.msra.mxu1 %v1321_v28  ;;  %1356 = vmatpush3.bf16.msra.mxu0 %v1353_v19  ;;  %v626_v28 = vld [vmem:[%s1918_s5 + $0x40] sm:$0xff] }
  0x27   :  { %1326 = vmatprep.subr.bf16.mxu1 %v1325_v35  ;;  %1358 = vmatprep.subr.bf16.mxu0 %v1357_v21  ;;  %v1369_v30 = vpack.c.bf16 %v627_v29, %v626_v28 }
  0x28   :  { %1085 = vmatmul.mubr.f32.gmra.mrb[2].mxu0 %v29_v38  ;;  %1109 = vmatmul.mubr.f32.gmra.mrb[2].mxu1 %v45_v39 }
  0x29   :  { %1087 = vmatprep.mubr.f32.mxu0 %v30_v40  ;;  %1111 = vmatprep.mubr.f32.mxu1 %v46_v41 }
  0x2a   :  { %1328 = vmatpush3.bf16.msra.mxu1 %v1325_v35  ;;  %1360 = vmatpush3.bf16.msra.mxu0 %v1357_v21  ;;  %v631_v35 = vld [vmem:[%s1918_s5 + $0x68] sm:$0xff] }
  0x2b   :  { %1330 = vmatprep.subr.bf16.mxu1 %v1329_v42  ;;  %1362 = vmatprep.subr.bf16.mxu0 %v1361_v24  ;;  %v1377_v36 = vpack.c.bf16 %v631_v35, %v630_v34 }
  0x2c   :  { %1088 = vmatmul.mubr.f32.gmra.mrb[4].mxu0 %v31_v45  ;;  %1112 = vmatmul.mubr.f32.gmra.mrb[4].mxu1 %v47_v46 }
  0x2d   :  { %1090 = vmatprep.mubr.f32.mxu0 %v32_v47  ;;  %1114 = vmatprep.mubr.f32.mxu1 %v48_v48 }
  0x2e   :  { %1332 = vmatpush3.bf16.msra.mxu1 %v1329_v42  ;;  %1364 = vmatpush3.bf16.msra.mxu0 %v1361_v24 }
  0x2f   :  { %1334 = vmatprep.subr.bf16.mxu1 %v1333_v49  ;;  %1366 = vmatprep.subr.bf16.mxu0 %v1365_v27 }
  0x30   :  { %1091 = vmatmul.mubr.f32.gmra.mrb[6].mxu0 %v33_v52  ;;  %1115 = vmatmul.mubr.f32.gmra.mrb[6].mxu1 %v49_v53 }
  0x31   :  { %1093 = vmatprep.mubr.f32.mxu0 %v34_v54  ;;  %1117 = vmatprep.mubr.f32.mxu1 %v50_v55 }
  0x32   :  { %1336 = vmatpush3.bf16.msra.mxu1 %v1333_v49  ;;  %1368 = vmatpush3.bf16.msra.mxu0 %v1365_v27 }
  0x33   :  { %1338 = vmatprep.subr.bf16.mxu1 %v1337_v56  ;;  %1370 = vmatprep.subr.bf16.mxu0 %v1369_v30 }
  0x34   :  { %1094 = vmatmul.mubr.f32.gmra.mrb[8].mxu0 %v35_v59  ;;  %1118 = vmatmul.mubr.f32.gmra.mrb[8].mxu1 %v51_v60 }
  0x35   :  { %1096 = vmatprep.mubr.f32.mxu0 %v36_v61  ;;  %1120 = vmatprep.mubr.f32.mxu1 %v52_v62 }
  0x36   :  { %1340 = vmatpush3.bf16.msra.mxu1 %v1337_v56  ;;  %1372 = vmatpush3.bf16.msra.mxu0 %v1369_v30 }
  0x37   :  { %1342 = vmatprep.subr.bf16.mxu1 %v1341_v63  ;;  %1374 = vmatprep.subr.bf16.mxu0 %v1373_v33 }
  0x38   :  { %1097 = vmatmul.mubr.f32.gmra.mrb[10].mxu0 %v37_v2  ;;  %1121 = vmatmul.mubr.f32.gmra.mrb[10].mxu1 %v53_v3 }
  0x39   :  { %1099 = vmatprep.mubr.f32.mxu0 %v38_v4  ;;  %1123 = vmatprep.mubr.f32.mxu1 %v54_v5 }
  0x3a   :  { %1344 = vmatpush3.bf16.msra.mxu1 %v1341_v63  ;;  %1376 = vmatpush3.bf16.msra.mxu0 %v1373_v33 }
  0x3b   :  { %1346 = vmatprep.subr.bf16.mxu1 %v1345_v6  ;;  %1378 = vmatprep.subr.bf16.mxu0 %v1377_v36 }
  0x3c   :  { %1100 = vmatmul.mubr.f32.gmra.mrb[12].mxu0 %v39_v7  ;;  %1124 = vmatmul.mubr.f32.gmra.mrb[12].mxu1 %v55_v8 }
  0x3d   :  { %1102 = vmatprep.mubr.f32.mxu0 %v40_v9  ;;  %1126 = vmatprep.mubr.f32.mxu1 %v56_v10 }
  0x3e   :  { %1348 = vmatpush3.bf16.msra.mxu1 %v1345_v6  ;;  %1380 = vmatpush3.bf16.msra.mxu0 %v1377_v36 }
  0x3f   :  { %1350 = vmatprep.subr.bf16.mxu1 %v1349_v15 }
  0x40   :  { %1103 = vmatmul.mubr.f32.gmra.mrb[14].mxu0 %v41_v11  ;;  %1127 = vmatmul.mubr.f32.gmra.mrb[14].mxu1 %v57_v12 }
  0x42   :  { %1352 = vmatpush3.bf16.msra.mxu1 %v1349_v15 }
  0xf7   :  { %v1083_v38 = vpop.f32.mrb[0].mxu0  ;;  %v1680_v39 = vpop.f32.mrb[0].mxu1 }
  0xf8   :  { %v153_v40 = vadd.f32 %v1083_v38, %v1678_v37  ;;  %v147_v41 = vpop.f32.mrb[1].mxu0  ;;  %v1683_v42 = vpop.f32.mrb[1].mxu1 }
  0xf9   :  { %v148_v43 = vadd.f32 %v1678_v37, %v147_v41  ;;  %v228_v30 = vadd.f32 %v1678_v37, %v1683_v42 }
  0xfa   :  { %v307_v47 = vmax.f32 %v153_v40, 0.0 }
  0xfb   :  { %v306_v44 = vmax.f32 %v148_v43, 0.0  ;;  %v1086_v45 = vpop.f32.mrb[2].mxu0  ;;  %v1686_v46 = vpop.f32.mrb[2].mxu1  ;;  %v322_v40 = vmax.f32 %v228_v30, 0.0 }
  0xfc   :  { %v163_v48 = vadd.f32 %v1086_v45, %v1678_v37  ;;  %v157_v49 = vpop.f32.mrb[3].mxu0  ;;  %v1689_v50 = vpop.f32.mrb[3].mxu1 }
  0xfd   :  { %v158_v51 = vadd.f32 %v1678_v37, %v157_v49  ;;  %1161 = vmatprep.mubr.f32.mxu1 %v306_v44  ;;  %v238_v41 = vadd.f32 %v1678_v37, %v1689_v50  ;;  %v233_v44 = vadd.f32 %v1680_v39, %v1678_v37 }
  0xfe   :  { %1162 = vmatmul.mubr.f32.vlgmr.msra.gmra.mrb[16].mxu1 %v307_v47  ;;  %v309_v55 = vmax.f32 %v163_v48, 0.0  ;;  %v243_v48 = vadd.f32 %v1686_v46, %v1678_v37 }
  0xff   :  { %v308_v52 = vmax.f32 %v158_v51, 0.0  ;;  %v1089_v53 = vpop.f32.mrb[4].mxu0  ;;  %v1692_v54 = vpop.f32.mrb[4].mxu1  ;;  %v324_v42 = vmax.f32 %v238_v41, 0.0  ;;  %v323_v47 = vmax.f32 %v233_v44, 0.0 }
 0x100   :  { %v173_v56 = vadd.f32 %v1089_v53, %v1678_v37  ;;  %v167_v57 = vpop.f32.mrb[5].mxu0  ;;  %v1695_v58 = vpop.f32.mrb[5].mxu1  ;;  %v325_v51 = vmax.f32 %v243_v48, 0.0  ;;  %v253_v39 = vadd.f32 %v1692_v54, %v1678_v37 }
 0x101   :  { %v168_v59 = vadd.f32 %v1678_v37, %v167_v57  ;;  %1164 = vmatprep.mubr.f32.mxu1 %v308_v52  ;;  %v248_v45 = vadd.f32 %v1678_v37, %v1695_v58 }
 0x102   :  { %1165 = vmatmul.mubr.f32.gmra.mrb[18].mxu1 %v309_v55  ;;  %v311_v63 = vmax.f32 %v173_v56, 0.0  ;;  %v327_v55 = vmax.f32 %v253_v39, 0.0 }
 0x103   :  { %v310_v60 = vmax.f32 %v168_v59, 0.0  ;;  %v1092_v61 = vpop.f32.mrb[6].mxu0  ;;  %v1698_v62 = vpop.f32.mrb[6].mxu1  ;;  %v326_v49 = vmax.f32 %v248_v45, 0.0 }
 0x104   :  { %v183_v0 = vadd.f32 %v1092_v61, %v1678_v37  ;;  %v177_v1 = vpop.f32.mrb[7].mxu0  ;;  %v257_v2 = vpop.f32.mrb[7].mxu1  ;;  %v263_v56 = vadd.f32 %v1698_v62, %v1678_v37 }
 0x105   :  { %v178_v3 = vadd.f32 %v1678_v37, %v177_v1  ;;  %1167 = vmatprep.mubr.f32.mxu1 %v310_v60  ;;  %v258_v50 = vadd.f32 %v1678_v37, %v257_v2 }
 0x106   :  { %1168 = vmatmul.mubr.f32.gmra.mrb[20].mxu1 %v311_v63  ;;  %v313_v7 = vmax.f32 %v183_v0, 0.0  ;;  %v329_v58 = vmax.f32 %v263_v56, 0.0 }
 0x107   :  { %v312_v4 = vmax.f32 %v178_v3, 0.0  ;;  %v1095_v5 = vpop.f32.mrb[8].mxu0  ;;  %v1702_v6 = vpop.f32.mrb[8].mxu1  ;;  %v328_v52 = vmax.f32 %v258_v50, 0.0 }
 0x108   :  { %v193_v8 = vadd.f32 %v1095_v5, %v1678_v37  ;;  %v187_v9 = vpop.f32.mrb[9].mxu0  ;;  %v267_v10 = vpop.f32.mrb[9].mxu1  ;;  %v273_v59 = vadd.f32 %v1702_v6, %v1678_v37 }
 0x109   :  { %v188_v11 = vadd.f32 %v1678_v37, %v187_v9  ;;  %1170 = vmatprep.mubr.f32.mxu1 %v312_v4  ;;  %v268_v53 = vadd.f32 %v1678_v37, %v267_v10  ;;  %v1748_v10 = vld [vmem:[%s1920_s4] ss:$0 sm:$0xff] }
 0x10a   :  { %1171 = vmatmul.mubr.f32.gmra.mrb[22].mxu1 %v313_v7  ;;  %v315_v15 = vmax.f32 %v193_v8, 0.0  ;;  %v331_v61 = vmax.f32 %v273_v59, 0.0  ;;  %v632_v7 = vld [vmem:[%s1918_s5 + $0x70] sm:$0xff]  ;;  %v633_v8 = vld [vmem:[%s1918_s5 + $0x78] sm:$0xff] }
 0x10b   :  { %v314_v12 = vmax.f32 %v188_v11, 0.0  ;;  %v1098_v13 = vpop.f32.mrb[10].mxu0  ;;  %v1706_v14 = vpop.f32.mrb[10].mxu1  ;;  %v330_v46 = vmax.f32 %v268_v53, 0.0  ;;  %v1381_v9 = vpack.c.bf16 %v633_v8, %v632_v7 }
 0x10c   :  { %v203_v16 = vadd.f32 %v1098_v13, %v1678_v37  ;;  %v197_v17 = vpop.f32.mrb[11].mxu0  ;;  %v277_v18 = vpop.f32.mrb[11].mxu1  ;;  %v283_v63 = vadd.f32 %v1706_v14, %v1678_v37 }
 0x10d   :  { %v198_v19 = vadd.f32 %v1678_v37, %v197_v17  ;;  %1173 = vmatprep.mubr.f32.mxu1 %v314_v12  ;;  %v278_v57 = vadd.f32 %v1678_v37, %v277_v18  ;;  %1382 = vmatprep.subr.bf16.mxu0 %v1381_v9 }
 0x10e   :  { %1174 = vmatmul.mubr.f32.gmra.mrb[24].mxu1 %v315_v15  ;;  %v317_v23 = vmax.f32 %v203_v16, 0.0  ;;  %v333_v1 = vmax.f32 %v283_v63, 0.0  ;;  %1384 = vmatpush3.bf16.msra.mxu0 %v1381_v9 }
 0x10f   :  { %v316_v20 = vmax.f32 %v198_v19, 0.0  ;;  %v1101_v21 = vpop.f32.mrb[12].mxu0  ;;  %v1125_v22 = vpop.f32.mrb[12].mxu1  ;;  %v332_v54 = vmax.f32 %v278_v57, 0.0 }
 0x110   :  { %v213_v24 = vadd.f32 %v1101_v21, %v1678_v37  ;;  %v207_v25 = vpop.f32.mrb[13].mxu0  ;;  %v287_v26 = vpop.f32.mrb[13].mxu1  ;;  %v293_v2 = vadd.f32 %v1125_v22, %v1678_v37 }
 0x111   :  { %v208_v27 = vadd.f32 %v1678_v37, %v207_v25  ;;  %1176 = vmatprep.mubr.f32.mxu1 %v316_v20  ;;  %v288_v60 = vadd.f32 %v1678_v37, %v287_v26 }
 0x112   :  { %1177 = vmatmul.mubr.f32.gmra.mrb[26].mxu1 %v317_v23  ;;  %v319_v32 = vmax.f32 %v213_v24, 0.0  ;;  %v335_v4 = vmax.f32 %v293_v2, 0.0 }
 0x113   :  { %v318_v28 = vmax.f32 %v208_v27, 0.0  ;;  %v1104_v29 = vpop.f32.mrb[14].mxu0  ;;  %v1128_v31 = vpop.f32.mrb[14].mxu1  ;;  %v334_v62 = vmax.f32 %v288_v60, 0.0 }
 0x114   :  { %v223_v33 = vadd.f32 %v1104_v29, %v1678_v37  ;;  %v217_v34 = vpop.f32.mrb[15].mxu0  ;;  %v297_v35 = vpop.f32.mrb[15].mxu1  ;;  %v303_v5 = vadd.f32 %v1128_v31, %v1678_v37 }
 0x115   :  { %v218_v36 = vadd.f32 %v1678_v37, %v217_v34  ;;  %1179 = vmatprep.mubr.f32.mxu1 %v318_v28  ;;  %v298_v0 = vadd.f32 %v1678_v37, %v297_v35 }
 0x116   :  { %1180 = vmatmul.mubr.f32.gmra.mrb[28].mxu1 %v319_v32  ;;  %v321_v43 = vmax.f32 %v223_v33, 0.0  ;;  %v337_v6 = vmax.f32 %v303_v5, 0.0 }
 0x117   :  { %v320_v38 = vmax.f32 %v218_v36, 0.0  ;;  %v336_v3 = vmax.f32 %v298_v0, 0.0 }
 0x119   :  { %1182 = vmatprep.mubr.f32.mxu1 %v320_v38 }
 0x11a   :  { %1183 = vmatmul.mubr.f32.gmra.mrb[30].mxu1 %v321_v43 }
 0x11b   :  { %1185 = vmatprep.mubr.f32.mxu1 %v322_v40 }
 0x11e   :  { %1186 = vmatmul.mubr.f32.gmra.mrb[32].mxu1 %v323_v47 }
 0x11f   :  { %1188 = vmatprep.mubr.f32.mxu1 %v324_v42 }
 0x122   :  { %1189 = vmatmul.mubr.f32.gmra.mrb[34].mxu1 %v325_v51 }
 0x123   :  { %1191 = vmatprep.mubr.f32.mxu1 %v326_v49 }
 0x126   :  { %1192 = vmatmul.mubr.f32.gmra.mrb[36].mxu1 %v327_v55 }
 0x127   :  { %1194 = vmatprep.mubr.f32.mxu1 %v328_v52 }
 0x12a   :  { %1195 = vmatmul.mubr.f32.gmra.mrb[38].mxu1 %v329_v58 }
 0x12b   :  { %1197 = vmatprep.mubr.f32.mxu1 %v330_v46 }
 0x12e   :  { %1198 = vmatmul.mubr.f32.gmra.mrb[40].mxu1 %v331_v61 }
 0x12f   :  { %1200 = vmatprep.mubr.f32.mxu1 %v332_v54 }
 0x132   :  { %1201 = vmatmul.mubr.f32.gmra.mrb[42].mxu1 %v333_v1 }
 0x133   :  { %1203 = vmatprep.mubr.f32.mxu1 %v334_v62 }
 0x136   :  { %1204 = vmatmul.mubr.f32.gmra.mrb[44].mxu1 %v335_v4 }
 0x137   :  { %1206 = vmatprep.mubr.f32.mxu1 %v336_v3 }
 0x13a   :  { %1207 = vmatmul.mubr.f32.gmra.mrb[46].mxu1 %v337_v6 }
 0x1d1   :  { %v1163_v37 = vpop.f32.mrb[16].mxu1 }
 0x1d2   :  { %v433_v11 = vadd.f32 %v1163_v37, %v1748_v10  ;;  %v427_v12 = vpop.f32.mrb[17].mxu1 }
 0x1d3   :  { %v428_v13 = vadd.f32 %v1748_v10, %v427_v12 }
 0x1d4   :  { %v587_v16 = vmax.f32 %v433_v11, 0.0 }
 0x1d5   :  { %v586_v14 = vmax.f32 %v428_v13, 0.0  ;;  %v1166_v15 = vpop.f32.mrb[18].mxu1 }
 0x1d6   :  { %v443_v17 = vadd.f32 %v1166_v15, %v1748_v10  ;;  %v437_v18 = vpop.f32.mrb[19].mxu1 }
 0x1d7   :  { %v438_v19 = vadd.f32 %v1748_v10, %v437_v18  ;;  %1241 = vmatprep.mubr.f32.mxu0 %v586_v14 }
 0x1d8   :  { %1242 = vmatmul.mubr.f32.vlgmr.msra.gmra.mrb[16].mxu0 %v587_v16  ;;  %v589_v22 = vmax.f32 %v443_v17, 0.0 }
 0x1d9   :  { %v588_v20 = vmax.f32 %v438_v19, 0.0  ;;  %v1169_v21 = vpop.f32.mrb[20].mxu1 }
 0x1da   :  { %v453_v23 = vadd.f32 %v1169_v21, %v1748_v10  ;;  %v447_v24 = vpop.f32.mrb[21].mxu1 }
 0x1db   :  { %v448_v25 = vadd.f32 %v1748_v10, %v447_v24  ;;  %1244 = vmatprep.mubr.f32.mxu0 %v588_v20 }
 0x1dc   :  { %1245 = vmatmul.mubr.f32.gmra.mrb[18].mxu0 %v589_v22  ;;  %v591_v28 = vmax.f32 %v453_v23, 0.0 }
 0x1dd   :  { %v590_v26 = vmax.f32 %v448_v25, 0.0  ;;  %v1172_v27 = vpop.f32.mrb[22].mxu1 }
 0x1de   :  { %v463_v29 = vadd.f32 %v1172_v27, %v1748_v10  ;;  %v457_v30 = vpop.f32.mrb[23].mxu1 }
 0x1df   :  { %v458_v31 = vadd.f32 %v1748_v10, %v457_v30  ;;  %1247 = vmatprep.mubr.f32.mxu0 %v590_v26 }
 0x1e0   :  { %1248 = vmatmul.mubr.f32.gmra.mrb[20].mxu0 %v591_v28  ;;  %v593_v34 = vmax.f32 %v463_v29, 0.0 }
 0x1e1   :  { %v592_v32 = vmax.f32 %v458_v31, 0.0  ;;  %v1175_v33 = vpop.f32.mrb[24].mxu1 }
 0x1e2   :  { %v473_v35 = vadd.f32 %v1175_v33, %v1748_v10  ;;  %v467_v36 = vpop.f32.mrb[25].mxu1 }
 0x1e3   :  { %v468_v38 = vadd.f32 %v1748_v10, %v467_v36  ;;  %1250 = vmatprep.mubr.f32.mxu0 %v592_v32 }
 0x1e4   :  { %1251 = vmatmul.mubr.f32.gmra.mrb[22].mxu0 %v593_v34  ;;  %v595_v43 = vmax.f32 %v473_v35, 0.0 }
 0x1e5   :  { %v594_v40 = vmax.f32 %v468_v38, 0.0  ;;  %v1178_v41 = vpop.f32.mrb[26].mxu1 }
 0x1e6   :  { %v483_v44 = vadd.f32 %v1178_v41, %v1748_v10  ;;  %v477_v42 = vpop.f32.mrb[27].mxu1 }
 0x1e7   :  { %v478_v45 = vadd.f32 %v1748_v10, %v477_v42  ;;  %1253 = vmatprep.mubr.f32.mxu0 %v594_v40 }
 0x1e8   :  { %1254 = vmatmul.mubr.f32.gmra.mrb[24].mxu0 %v595_v43  ;;  %v597_v49 = vmax.f32 %v483_v44, 0.0 }
 0x1e9   :  { %v596_v47 = vmax.f32 %v478_v45, 0.0  ;;  %v1181_v48 = vpop.f32.mrb[28].mxu1  ;;  %v1785_v45 = vld [vmem:[%s1921_s6] ss:$0 sm:$0xff] }
 0x1ea   :  { %v493_v50 = vadd.f32 %v1181_v48, %v1748_v10  ;;  %v487_v51 = vpop.f32.mrb[29].mxu1 }
 0x1eb   :  { %v488_v39 = vadd.f32 %v1748_v10, %v487_v51  ;;  %1256 = vmatprep.mubr.f32.mxu0 %v596_v47 }
 0x1ec   :  { %1257 = vmatmul.mubr.f32.gmra.mrb[26].mxu0 %v597_v49  ;;  %v599_v55 = vmax.f32 %v493_v50, 0.0 }
 0x1ed   :  { %v598_v52 = vmax.f32 %v488_v39, 0.0  ;;  %v1184_v53 = vpop.f32.mrb[30].mxu1 }
 0x1ee   :  { %v503_v56 = vadd.f32 %v1184_v53, %v1748_v10  ;;  %v497_v46 = vpop.f32.mrb[31].mxu1 }
 0x1ef   :  { %v498_v57 = vadd.f32 %v1748_v10, %v497_v46  ;;  %1259 = vmatprep.mubr.f32.mxu0 %v598_v52 }
 0x1f0   :  { %1260 = vmatmul.mubr.f32.gmra.mrb[28].mxu0 %v599_v55  ;;  %v601_v54 = vmax.f32 %v503_v56, 0.0 }
 0x1f1   :  { %v600_v58 = vmax.f32 %v498_v57, 0.0  ;;  %v1187_v59 = vpop.f32.mrb[32].mxu1 }
 0x1f2   :  { %v513_v60 = vadd.f32 %v1187_v59, %v1748_v10  ;;  %v507_v61 = vpop.f32.mrb[33].mxu1 }
 0x1f3   :  { %v508_v63 = vadd.f32 %v1748_v10, %v507_v61  ;;  %1262 = vmatprep.mubr.f32.mxu0 %v600_v58 }
 0x1f4   :  { %1263 = vmatmul.mubr.f32.gmra.mrb[30].mxu0 %v601_v54  ;;  %v603_v1 = vmax.f32 %v513_v60, 0.0 }
 0x1f5   :  { %v602_v62 = vmax.f32 %v508_v63, 0.0  ;;  %v1190_v0 = vpop.f32.mrb[34].mxu1 }
 0x1f6   :  { %v523_v2 = vadd.f32 %v1190_v0, %v1748_v10  ;;  %v517_v3 = vpop.f32.mrb[35].mxu1 }
 0x1f7   :  { %v518_v4 = vadd.f32 %v1748_v10, %v517_v3  ;;  %1265 = vmatprep.mubr.f32.mxu0 %v602_v62 }
 0x1f8   :  { %1266 = vmatmul.mubr.f32.gmra.mrb[32].mxu0 %v603_v1  ;;  %v605_v7 = vmax.f32 %v523_v2, 0.0 }
 0x1f9   :  { %v604_v5 = vmax.f32 %v518_v4, 0.0  ;;  %v1193_v6 = vpop.f32.mrb[36].mxu1 }
 0x1fa   :  { %v533_v8 = vadd.f32 %v1193_v6, %v1748_v10  ;;  %v527_v9 = vpop.f32.mrb[37].mxu1 }
 0x1fb   :  { %v528_v37 = vadd.f32 %v1748_v10, %v527_v9  ;;  %1268 = vmatprep.mubr.f32.mxu0 %v604_v5 }
 0x1fc   :  { %1269 = vmatmul.mubr.f32.gmra.mrb[34].mxu0 %v605_v7  ;;  %v607_v13 = vmax.f32 %v533_v8, 0.0 }
 0x1fd   :  { %v606_v11 = vmax.f32 %v528_v37, 0.0  ;;  %v1196_v12 = vpop.f32.mrb[38].mxu1 }
 0x1fe   :  { %v543_v14 = vadd.f32 %v1196_v12, %v1748_v10  ;;  %v537_v15 = vpop.f32.mrb[39].mxu1 }
 0x1ff   :  { %v538_v16 = vadd.f32 %v1748_v10, %v537_v15  ;;  %1271 = vmatprep.mubr.f32.mxu0 %v606_v11 }
 0x200   :  { %1272 = vmatmul.mubr.f32.gmra.mrb[36].mxu0 %v607_v13  ;;  %v609_v19 = vmax.f32 %v543_v14, 0.0 }
 0x201   :  { %v608_v17 = vmax.f32 %v538_v16, 0.0  ;;  %v1199_v18 = vpop.f32.mrb[40].mxu1 }
 0x202   :  { %v553_v20 = vadd.f32 %v1199_v18, %v1748_v10  ;;  %v547_v21 = vpop.f32.mrb[41].mxu1 }
 0x203   :  { %v548_v22 = vadd.f32 %v1748_v10, %v547_v21  ;;  %1274 = vmatprep.mubr.f32.mxu0 %v608_v17 }
 0x204   :  { %1275 = vmatmul.mubr.f32.gmra.mrb[38].mxu0 %v609_v19  ;;  %v611_v25 = vmax.f32 %v553_v20, 0.0 }
 0x205   :  { %v610_v23 = vmax.f32 %v548_v22, 0.0  ;;  %v1202_v24 = vpop.f32.mrb[42].mxu1 }
 0x206   :  { %v563_v26 = vadd.f32 %v1202_v24, %v1748_v10  ;;  %v557_v27 = vpop.f32.mrb[43].mxu1 }
 0x207   :  { %v558_v28 = vadd.f32 %v1748_v10, %v557_v27  ;;  %1277 = vmatprep.mubr.f32.mxu0 %v610_v23 }
 0x208   :  { %1278 = vmatmul.mubr.f32.gmra.mrb[40].mxu0 %v611_v25  ;;  %v613_v31 = vmax.f32 %v563_v26, 0.0 }
 0x209   :  { %v612_v29 = vmax.f32 %v558_v28, 0.0  ;;  %v1205_v30 = vpop.f32.mrb[44].mxu1 }
 0x20a   :  { %v573_v32 = vadd.f32 %v1205_v30, %v1748_v10  ;;  %v567_v33 = vpop.f32.mrb[45].mxu1 }
 0x20b   :  { %v568_v34 = vadd.f32 %v1748_v10, %v567_v33  ;;  %1280 = vmatprep.mubr.f32.mxu0 %v612_v29 }
 0x20c   :  { %1281 = vmatmul.mubr.f32.gmra.mrb[42].mxu0 %v613_v31  ;;  %v615_v38 = vmax.f32 %v573_v32, 0.0 }
 0x20d   :  { %v614_v35 = vmax.f32 %v568_v34, 0.0  ;;  %v1208_v36 = vpop.f32.mrb[46].mxu1 }
 0x20e   :  { %v583_v40 = vadd.f32 %v1208_v36, %v1748_v10  ;;  %v577_v41 = vpop.f32.mrb[47].mxu1 }
 0x20f   :  { %v578_v43 = vadd.f32 %v1748_v10, %v577_v41  ;;  %1283 = vmatprep.mubr.f32.mxu0 %v614_v35 }
 0x210   :  { %1284 = vmatmul.mubr.f32.gmra.mrb[44].mxu0 %v615_v38  ;;  %v617_v42 = vmax.f32 %v583_v40, 0.0 }
 0x211   :  { %v616_v44 = vmax.f32 %v578_v43, 0.0 }
 0x213   :  { %1286 = vmatprep.mubr.f32.mxu0 %v616_v44 }
 0x214   :  { %1287 = vmatmul.mubr.f32.gmra.mrb[46].mxu0 %v617_v42 }
 0x2ab   :  { %v1243_v47 = vpop.f32.mrb[16].mxu0 }
 0x2ac   :  { %v713_v48 = vadd.f32 %v1243_v47, %v1785_v45  ;;  %v707_v49 = vpop.f32.mrb[17].mxu0 }
 0x2ad   :  { %v708_v50 = vadd.f32 %v1785_v45, %v707_v49 }
 0x2ae   :  { %867 = vst [vmem:[%s1922_s7 + $0x8] sm:$0xff] %v713_v48 }
 0x2af   :  { %866 = vst [vmem:[%s1922_s7] sm:$0xff] %v708_v50  ;;  %v1246_v10 = vpop.f32.mrb[18].mxu0 }
 0x2b0   :  { %v723_v51 = vadd.f32 %v1246_v10, %v1785_v45  ;;  %v717_v39 = vpop.f32.mrb[19].mxu0 }
 0x2b1   :  { %v718_v52 = vadd.f32 %v1785_v45, %v717_v39 }
 0x2b2   :  { %869 = vst [vmem:[%s1922_s7 + $0x18] sm:$0xff] %v723_v51 }
 0x2b3   :  { %868 = vst [vmem:[%s1922_s7 + $0x10] sm:$0xff] %v718_v52  ;;  %v1249_v53 = vpop.f32.mrb[20].mxu0 }
 0x2b4   :  { %v733_v55 = vadd.f32 %v1249_v53, %v1785_v45  ;;  %v727_v56 = vpop.f32.mrb[21].mxu0 }
 0x2b5   :  { %v728_v46 = vadd.f32 %v1785_v45, %v727_v56 }
 0x2b6   :  { %871 = vst [vmem:[%s1922_s7 + $0x28] sm:$0xff] %v733_v55 }
 0x2b7   :  { %870 = vst [vmem:[%s1922_s7 + $0x20] sm:$0xff] %v728_v46  ;;  %v1252_v57 = vpop.f32.mrb[22].mxu0 }
 0x2b8   :  { %v743_v58 = vadd.f32 %v1252_v57, %v1785_v45  ;;  %v737_v59 = vpop.f32.mrb[23].mxu0 }
 0x2b9   :  { %v738_v54 = vadd.f32 %v1785_v45, %v737_v59 }
 0x2ba   :  { %873 = vst [vmem:[%s1922_s7 + $0x38] sm:$0xff] %v743_v58 }
 0x2bb   :  { %872 = vst [vmem:[%s1922_s7 + $0x30] sm:$0xff] %v738_v54  ;;  %v1255_v60 = vpop.f32.mrb[24].mxu0 }
 0x2bc   :  { %v753_v61 = vadd.f32 %v1255_v60, %v1785_v45  ;;  %v747_v63 = vpop.f32.mrb[25].mxu0 }
 0x2bd   :  { %v748_v62 = vadd.f32 %v1785_v45, %v747_v63 }
 0x2be   :  { %875 = vst [vmem:[%s1922_s7 + $0x48] sm:$0xff] %v753_v61 }
 0x2bf   :  { %874 = vst [vmem:[%s1922_s7 + $0x40] sm:$0xff] %v748_v62  ;;  %v1258_v0 = vpop.f32.mrb[26].mxu0 }
 0x2c0   :  { %v763_v1 = vadd.f32 %v1258_v0, %v1785_v45  ;;  %v757_v2 = vpop.f32.mrb[27].mxu0 }
 0x2c1   :  { %v758_v3 = vadd.f32 %v1785_v45, %v757_v2 }
 0x2c2   :  { %877 = vst [vmem:[%s1922_s7 + $0x58] sm:$0xff] %v763_v1 }
 0x2c3   :  { %876 = vst [vmem:[%s1922_s7 + $0x50] sm:$0xff] %v758_v3  ;;  %v1261_v4 = vpop.f32.mrb[28].mxu0 }
 0x2c4   :  { %v773_v5 = vadd.f32 %v1261_v4, %v1785_v45  ;;  %v767_v6 = vpop.f32.mrb[29].mxu0 }
 0x2c5   :  { %v768_v7 = vadd.f32 %v1785_v45, %v767_v6 }
 0x2c6   :  { %879 = vst [vmem:[%s1922_s7 + $0x68] sm:$0xff] %v773_v5 }
 0x2c7   :  { %878 = vst [vmem:[%s1922_s7 + $0x60] sm:$0xff] %v768_v7  ;;  %v1264_v8 = vpop.f32.mrb[30].mxu0 }
 0x2c8   :  { %v783_v9 = vadd.f32 %v1264_v8, %v1785_v45  ;;  %v777_v37 = vpop.f32.mrb[31].mxu0 }
 0x2c9   :  { %v778_v11 = vadd.f32 %v1785_v45, %v777_v37 }
 0x2ca   :  { %881 = vst [vmem:[%s1922_s7 + $0x78] sm:$0xff] %v783_v9 }
 0x2cb   :  { %880 = vst [vmem:[%s1922_s7 + $0x70] sm:$0xff] %v778_v11  ;;  %v1267_v12 = vpop.f32.mrb[32].mxu0 }
 0x2cc   :  { %v793_v13 = vadd.f32 %v1267_v12, %v1785_v45  ;;  %v787_v14 = vpop.f32.mrb[33].mxu0 }
 0x2cd   :  { %v788_v15 = vadd.f32 %v1785_v45, %v787_v14 }
 0x2ce   :  { %883 = vst [vmem:[%s1922_s7 + $0x88] sm:$0xff] %v793_v13 }
 0x2cf   :  { %882 = vst [vmem:[%s1922_s7 + $0x80] sm:$0xff] %v788_v15  ;;  %v1270_v16 = vpop.f32.mrb[34].mxu0 }
 0x2d0   :  { %v803_v17 = vadd.f32 %v1270_v16, %v1785_v45  ;;  %v797_v18 = vpop.f32.mrb[35].mxu0 }
 0x2d1   :  { %v798_v19 = vadd.f32 %v1785_v45, %v797_v18 }
 0x2d2   :  { %885 = vst [vmem:[%s1922_s7 + $0x98] sm:$0xff] %v803_v17 }
 0x2d3   :  { %884 = vst [vmem:[%s1922_s7 + $0x90] sm:$0xff] %v798_v19  ;;  %v1273_v20 = vpop.f32.mrb[36].mxu0 }
 0x2d4   :  { %v813_v21 = vadd.f32 %v1273_v20, %v1785_v45  ;;  %v807_v22 = vpop.f32.mrb[37].mxu0 }
 0x2d5   :  { %v808_v23 = vadd.f32 %v1785_v45, %v807_v22 }
 0x2d6   :  { %887 = vst [vmem:[%s1922_s7 + $0xa8] sm:$0xff] %v813_v21 }
 0x2d7   :  { %886 = vst [vmem:[%s1922_s7 + $0xa0] sm:$0xff] %v808_v23  ;;  %v1276_v24 = vpop.f32.mrb[38].mxu0 }
 0x2d8   :  { %v823_v25 = vadd.f32 %v1276_v24, %v1785_v45  ;;  %v817_v26 = vpop.f32.mrb[39].mxu0 }
 0x2d9   :  { %v818_v27 = vadd.f32 %v1785_v45, %v817_v26 }
 0x2da   :  { %889 = vst [vmem:[%s1922_s7 + $0xb8] sm:$0xff] %v823_v25 }
 0x2db   :  { %888 = vst [vmem:[%s1922_s7 + $0xb0] sm:$0xff] %v818_v27  ;;  %v1279_v28 = vpop.f32.mrb[40].mxu0 }
 0x2dc   :  { %v833_v29 = vadd.f32 %v1279_v28, %v1785_v45  ;;  %v827_v30 = vpop.f32.mrb[41].mxu0 }
 0x2dd   :  { %v828_v31 = vadd.f32 %v1785_v45, %v827_v30 }
 0x2de   :  { %891 = vst [vmem:[%s1922_s7 + $0xc8] sm:$0xff] %v833_v29 }
 0x2df   :  { %890 = vst [vmem:[%s1922_s7 + $0xc0] sm:$0xff] %v828_v31  ;;  %v1282_v32 = vpop.f32.mrb[42].mxu0 }
 0x2e0   :  { %v843_v33 = vadd.f32 %v1282_v32, %v1785_v45  ;;  %v837_v34 = vpop.f32.mrb[43].mxu0 }
 0x2e1   :  { %v838_v35 = vadd.f32 %v1785_v45, %v837_v34 }
 0x2e2   :  { %893 = vst [vmem:[%s1922_s7 + $0xd8] sm:$0xff] %v843_v33 }
 0x2e3   :  { %892 = vst [vmem:[%s1922_s7 + $0xd0] sm:$0xff] %v838_v35  ;;  %v1285_v36 = vpop.f32.mrb[44].mxu0 }
 0x2e4   :  { %v853_v38 = vadd.f32 %v1285_v36, %v1785_v45  ;;  %v847_v40 = vpop.f32.mrb[45].mxu0 }
 0x2e5   :  { %v848_v41 = vadd.f32 %v1785_v45, %v847_v40 }
 0x2e6   :  { %895 = vst [vmem:[%s1922_s7 + $0xe8] sm:$0xff] %v853_v38 }
 0x2e7   :  { %894 = vst [vmem:[%s1922_s7 + $0xe0] sm:$0xff] %v848_v41  ;;  %v1288_v43 = vpop.f32.mrb[46].mxu0 }
 0x2e8   :  { %v863_v44 = vadd.f32 %v1288_v43, %v1785_v45  ;;  %v857_v42 = vpop.f32.mrb[47].mxu0 }
 0x2e9   :  { %v858_v47 = vadd.f32 %v1785_v45, %v857_v42 }
 0x2ea   :  { %897 = vst [vmem:[%s1922_s7 + $0xf8] sm:$0xff] %v863_v44 }
 0x2eb   :  { %896 = vst [vmem:[%s1922_s7 + $0xf0] sm:$0xff] %v858_v47 }

</bundles_post_ra>
